<compile_context>
chip_gen: v6e
topology: v6e:2x2x1
jax: 0.10.0
libtpu: 0.0.40
codegen_flags: <defaults>
</compile_context>

<pallas_src>
import functools

import jax
import jax.numpy as jnp
from jax.experimental import pallas as pl
from jax.experimental.pallas import tpu as pltpu


def _stdl_kernel(x_ref, w1_ref, b1_ref, w2_ref, b2_ref,
                 wih_ref, whh_ref, blstm_ref,
                 b_ref, hn_ref, cn_ref, *, batch, seq_len):
    """Whole forward pass in one invocation.

    x_ref   : (B*T, X)  flattened input rows (row = b*T + t)
    w1/b1   : (X, P), (1, P)   PreProcess fc1 (weights stored transposed)
    w2/b2   : (P, P), (1, P)   PreProcess fc2
    wih     : (P, 4H)          LSTM input->gates weights (transposed)
    whh     : (H, 4H)          LSTM hidden->gates weights (transposed)
    blstm   : (1, 4H)          pre-summed b_ih + b_hh
    b_ref   : (B, T*H)         LSTM outputs, lane-dense (reshaped to (B,T,H) outside)
    hn/cn   : (B, H)           final hidden / cell state
    """
    B, T = batch, seq_len
    H = whh_ref.shape[0]

    # ---- time-independent part: PreProcess + input-to-gate projection, batched over B*T rows ----
    x = x_ref[...]                                                       # (B*T, X)
    h1 = jnp.dot(x, w1_ref[...], preferred_element_type=jnp.float32) + b1_ref[...]
    h1 = jnp.maximum(h1, 0.0)
    px = jnp.dot(h1, w2_ref[...], preferred_element_type=jnp.float32) + b2_ref[...]
    px = jnp.maximum(px, 0.0)                                            # (B*T, P)
    gx = jnp.dot(px, wih_ref[...], preferred_element_type=jnp.float32) + blstm_ref[...]
    gx = gx.reshape(B, T, 4 * H)                                         # i|f|g|o pre-activations

    whh = whh_ref[...]                                                   # hoisted out of the loop
    h = jnp.zeros((B, H), jnp.float32)
    c = jnp.zeros((B, H), jnp.float32)
    outs = []

    # ---- serial LSTM recurrence (PyTorch gate order i, f, g, o), fully unrolled ----
    for t in range(T):
        gates = gx[:, t, :] + jnp.dot(h, whh, preferred_element_type=jnp.float32)  # (B, 4H)
        sig = jax.nn.sigmoid(gates)      # full-vreg transcendental on the EUP
        tnh = jnp.tanh(gates)            # full-vreg transcendental on the EUP
        i_g = sig[:, 0 * H:1 * H]
        f_g = sig[:, 1 * H:2 * H]
        g_g = tnh[:, 2 * H:3 * H]
        o_g = sig[:, 3 * H:4 * H]
        c = f_g * c + i_g * g_g
        h = o_g * jnp.tanh(c)
        outs.append(h)

    b_ref[...] = jnp.concatenate(outs, axis=-1)   # single lane-dense (B, T*H) store
    hn_ref[...] = h
    cn_ref[...] = c


def stdl_forward(images, params):
    """images: (B, T, X) float32.  Returns (b, (h_n, c_n)) like the PyTorch LSTM:
       b: (B, T, H), h_n/c_n: (1, B, H)."""
    B, T, X = images.shape
    H = params["whh"].shape[0]

    x2d = images.reshape(B * T, X)            # free row-major reshape (no HBM transpose)
    b_lstm = params["bih"] + params["bhh"]    # pre-sum the two LSTM biases once, outside

    vmem = pl.BlockSpec(memory_space=pltpu.MemorySpace.VMEM)

    b_flat, h_n, c_n = pl.pallas_call(
        functools.partial(_stdl_kernel, batch=B, seq_len=T),
        out_shape=(
            jax.ShapeDtypeStruct((B, T * H), jnp.float32),   # b, flattened & lane-dense
            jax.ShapeDtypeStruct((B, H), jnp.float32),       # h_n
            jax.ShapeDtypeStruct((B, H), jnp.float32),       # c_n
        ),
        in_specs=[vmem] * 8,
        out_specs=(vmem, vmem, vmem),
    )(x2d, params["w1"], params["b1"], params["w2"], params["b2"],
      params["wih"], params["whh"], b_lstm)

    b = b_flat.reshape(B, T, H)               # free row-major reshape
    return b, (h_n[None], c_n[None])          # h_n/c_n: (1, B, H) like PyTorch


def stdl_forward_ref(images, params):
    """Pure-JAX reference (same math, lax.scan recurrence) for correctness checking."""
    B, T, X = images.shape
    H = params["whh"].shape[0]
    x = images.reshape(B * T, X)
    h1 = jax.nn.relu(x @ params["w1"] + params["b1"])
    px = jax.nn.relu(h1 @ params["w2"] + params["b2"]).reshape(B, T, -1)
    blstm = params["bih"] + params["bhh"]

    def step(carry, xt):
        h, c = carry
        gates = xt @ params["wih"] + blstm + h @ params["whh"]
        i = jax.nn.sigmoid(gates[:, 0:H])
        f = jax.nn.sigmoid(gates[:, H:2 * H])
        g = jnp.tanh(gates[:, 2 * H:3 * H])
        o = jax.nn.sigmoid(gates[:, 3 * H:4 * H])
        c = f * c + i * g
        h = o * jnp.tanh(c)
        return (h, c), h

    h0 = jnp.zeros((B, H), jnp.float32)
    c0 = jnp.zeros((B, H), jnp.float32)
    (hT, cT), hs = jax.lax.scan(step, (h0, c0), jnp.swapaxes(px, 0, 1))
    return jnp.swapaxes(hs, 0, 1), (hT[None], cT[None])


def init_params(key, x_size, processed_x_size, b_size):
    """Deterministic synthetic init (PyTorch-style shapes, stored transposed as (in, out))."""
    X, P, H = x_size, processed_x_size, b_size
    keys = jax.random.split(key, 8)
    u = lambda k, shape, scale: jax.random.uniform(k, shape, jnp.float32, -scale, scale)
    return {
        # PreProcess fc1/fc2
        "w1": u(keys[0], (X, P), 1.0 / (X ** 0.5)),
        "b1": u(keys[1], (1, P), 1.0 / (X ** 0.5)),
        "w2": u(keys[2], (P, P), 1.0 / (P ** 0.5)),
        "b2": u(keys[3], (1, P), 1.0 / (P ** 0.5)),
        # LSTM: PyTorch W_ih (4H, P) -> stored (P, 4H); W_hh (4H, H) -> (H, 4H)
        "wih": u(keys[4], (P, 4 * H), 1.0 / (H ** 0.5)),
        "whh": u(keys[5], (H, 4 * H), 1.0 / (H ** 0.5)),
        "bih": u(keys[6], (1, 4 * H), 1.0 / (H ** 0.5)),
        "bhh": u(keys[7], (1, 4 * H), 1.0 / (H ** 0.5)),
    }


if __name__ == "__main__":
    # Small shapes consistent with the module: images (B, T, x_size).
    B, T = 2, 8
    x_size, processed_x_size, b_size = 32, 24, 16   # z_size unused by forward()

    key = jax.random.PRNGKey(0)
    k_x, k_p = jax.random.split(key)
    images = jax.random.uniform(k_x, (B, T, x_size), jnp.float32)  # MNIST-like pixels in [0,1)
    params = init_params(k_p, x_size, processed_x_size, b_size)

    b, (h_n, c_n) = jax.jit(stdl_forward)(images, params)
    jax.block_until_ready((b, h_n, c_n))

    assert b.shape == (B, T, b_size)
    assert h_n.shape == (1, B, b_size) and c_n.shape == (1, B, b_size)

    # Numerical check against the pure-JAX reference.
    b_r, (h_r, c_r) = jax.jit(stdl_forward_ref)(images, params)
    assert jnp.allclose(b, b_r, atol=1e-3, rtol=1e-3)
    assert jnp.allclose(h_n, h_r, atol=1e-3, rtol=1e-3)
    assert jnp.allclose(c_n, c_r, atol=1e-3, rtol=1e-3)

    print("KERNEL_OK")
</pallas_src>

<mosaic_0001>
module attributes {stable_mosaic.version = 11 : i64} {
  func.func @_stdl_kernel(%arg0: memref<16x32xf32, #tpu.memory_space<vmem>>, %arg1: memref<32x24xf32, #tpu.memory_space<vmem>>, %arg2: memref<1x24xf32, #tpu.memory_space<vmem>>, %arg3: memref<24x24xf32, #tpu.memory_space<vmem>>, %arg4: memref<1x24xf32, #tpu.memory_space<vmem>>, %arg5: memref<24x64xf32, #tpu.memory_space<vmem>>, %arg6: memref<16x64xf32, #tpu.memory_space<vmem>>, %arg7: memref<1x64xf32, #tpu.memory_space<vmem>>, %arg8: memref<2x128xf32, #tpu.memory_space<vmem>>, %arg9: memref<2x16xf32, #tpu.memory_space<vmem>>, %arg10: memref<2x16xf32, #tpu.memory_space<vmem>>) attributes {dimension_semantics = [], scalar_prefetch = 0 : i64, scratch_operands = 0 : i64, tpu.core_type = #tpu.core_type<tc>} {
    %c0 = arith.constant 0 : index
    %c0_0 = arith.constant 0 : index
    %0 = vector.load %arg0[%c0, %c0_0] : memref<16x32xf32, #tpu.memory_space<vmem>>, vector<16x32xf32>
    %c0_1 = arith.constant 0 : index
    %c0_2 = arith.constant 0 : index
    %1 = vector.load %arg1[%c0_1, %c0_2] : memref<32x24xf32, #tpu.memory_space<vmem>>, vector<32x24xf32>
    %cst = arith.constant dense<0.000000e+00> : vector<16x24xf32>
    %2 = tpu.matmul %0, %1, %cst {dimension_numbers = #tpu.dot_dimension_numbers<[1], [0], [0], [1], [0, 0, 1, 1], [], []>} : vector<16x32xf32>, vector<32x24xf32>, vector<16x24xf32> -> vector<16x24xf32>
    %c0_3 = arith.constant 0 : index
    %c0_4 = arith.constant 0 : index
    %3 = vector.load %arg2[%c0_3, %c0_4] : memref<1x24xf32, #tpu.memory_space<vmem>>, vector<1x24xf32>
    %4 = vector.broadcast %3 : vector<1x24xf32> to vector<16x24xf32>
    %5 = arith.addf %2, %4 : vector<16x24xf32>
    %cst_5 = arith.constant 0.000000e+00 : f32
    %6 = vector.broadcast %cst_5 : f32 to vector<16x24xf32>
    %7 = arith.maximumf %5, %6 : vector<16x24xf32>
    %c0_6 = arith.constant 0 : index
    %c0_7 = arith.constant 0 : index
    %8 = vector.load %arg3[%c0_6, %c0_7] : memref<24x24xf32, #tpu.memory_space<vmem>>, vector<24x24xf32>
    %cst_8 = arith.constant dense<0.000000e+00> : vector<16x24xf32>
    %9 = tpu.matmul %7, %8, %cst_8 {dimension_numbers = #tpu.dot_dimension_numbers<[1], [0], [0], [1], [0, 0, 1, 1], [], []>} : vector<16x24xf32>, vector<24x24xf32>, vector<16x24xf32> -> vector<16x24xf32>
    %c0_9 = arith.constant 0 : index
    %c0_10 = arith.constant 0 : index
    %10 = vector.load %arg4[%c0_9, %c0_10] : memref<1x24xf32, #tpu.memory_space<vmem>>, vector<1x24xf32>
    %11 = vector.broadcast %10 : vector<1x24xf32> to vector<16x24xf32>
    %12 = arith.addf %9, %11 : vector<16x24xf32>
    %cst_11 = arith.constant 0.000000e+00 : f32
    %13 = vector.broadcast %cst_11 : f32 to vector<16x24xf32>
    %14 = arith.maximumf %12, %13 : vector<16x24xf32>
    %c0_12 = arith.constant 0 : index
    %c0_13 = arith.constant 0 : index
    %15 = vector.load %arg5[%c0_12, %c0_13] : memref<24x64xf32, #tpu.memory_space<vmem>>, vector<24x64xf32>
    %cst_14 = arith.constant dense<0.000000e+00> : vector<16x64xf32>
    %16 = tpu.matmul %14, %15, %cst_14 {dimension_numbers = #tpu.dot_dimension_numbers<[1], [0], [0], [1], [0, 0, 1, 1], [], []>} : vector<16x24xf32>, vector<24x64xf32>, vector<16x64xf32> -> vector<16x64xf32>
    %c0_15 = arith.constant 0 : index
    %c0_16 = arith.constant 0 : index
    %17 = vector.load %arg7[%c0_15, %c0_16] : memref<1x64xf32, #tpu.memory_space<vmem>>, vector<1x64xf32>
    %18 = vector.broadcast %17 : vector<1x64xf32> to vector<16x64xf32>
    %19 = arith.addf %16, %18 : vector<16x64xf32>
    %20 = vector.shape_cast %19 : vector<16x64xf32> to vector<2x8x64xf32>
    %c0_17 = arith.constant 0 : index
    %c0_18 = arith.constant 0 : index
    %21 = vector.load %arg6[%c0_17, %c0_18] : memref<16x64xf32, #tpu.memory_space<vmem>>, vector<16x64xf32>
    %cst_19 = arith.constant 0.000000e+00 : f32
    %22 = vector.broadcast %cst_19 : f32 to vector<2x16xf32>
    %cst_20 = arith.constant 0.000000e+00 : f32
    %23 = vector.broadcast %cst_20 : f32 to vector<2x16xf32>
    %24 = vector.extract_strided_slice %20 {offsets = [0, 0, 0], sizes = [2, 1, 64], strides = [1, 1, 1]} : vector<2x8x64xf32> to vector<2x1x64xf32>
    %25 = vector.shape_cast %24 : vector<2x1x64xf32> to vector<2x64xf32>
    %cst_21 = arith.constant dense<0.000000e+00> : vector<2x64xf32>
    %26 = tpu.matmul %22, %21, %cst_21 {dimension_numbers = #tpu.dot_dimension_numbers<[1], [0], [0], [1], [0, 0, 1, 1], [], []>} : vector<2x16xf32>, vector<16x64xf32>, vector<2x64xf32> -> vector<2x64xf32>
    %27 = arith.addf %25, %26 : vector<2x64xf32>
    %28 = arith.negf %27 : vector<2x64xf32>
    %29 = math.exp %28 : vector<2x64xf32>
    %cst_22 = arith.constant 1.000000e+00 : f32
    %30 = vector.broadcast %cst_22 : f32 to vector<2x64xf32>
    %31 = arith.addf %30, %29 : vector<2x64xf32>
    %32 = arith.divf %30, %31 : vector<2x64xf32>
    %33 = math.tanh %27 : vector<2x64xf32>
    %34 = vector.extract_strided_slice %32 {offsets = [0, 0], sizes = [2, 16], strides = [1, 1]} : vector<2x64xf32> to vector<2x16xf32>
    %35 = vector.extract_strided_slice %32 {offsets = [0, 16], sizes = [2, 16], strides = [1, 1]} : vector<2x64xf32> to vector<2x16xf32>
    %36 = vector.extract_strided_slice %33 {offsets = [0, 32], sizes = [2, 16], strides = [1, 1]} : vector<2x64xf32> to vector<2x16xf32>
    %37 = vector.extract_strided_slice %32 {offsets = [0, 48], sizes = [2, 16], strides = [1, 1]} : vector<2x64xf32> to vector<2x16xf32>
    %38 = arith.mulf %35, %23 : vector<2x16xf32>
    %39 = arith.mulf %34, %36 : vector<2x16xf32>
    %40 = arith.addf %38, %39 : vector<2x16xf32>
    %41 = math.tanh %40 : vector<2x16xf32>
    %42 = arith.mulf %37, %41 : vector<2x16xf32>
    %43 = vector.extract_strided_slice %20 {offsets = [0, 1, 0], sizes = [2, 1, 64], strides = [1, 1, 1]} : vector<2x8x64xf32> to vector<2x1x64xf32>
    %44 = vector.shape_cast %43 : vector<2x1x64xf32> to vector<2x64xf32>
    %cst_23 = arith.constant dense<0.000000e+00> : vector<2x64xf32>
    %45 = tpu.matmul %42, %21, %cst_23 {dimension_numbers = #tpu.dot_dimension_numbers<[1], [0], [0], [1], [0, 0, 1, 1], [], []>} : vector<2x16xf32>, vector<16x64xf32>, vector<2x64xf32> -> vector<2x64xf32>
    %46 = arith.addf %44, %45 : vector<2x64xf32>
    %47 = arith.negf %46 : vector<2x64xf32>
    %48 = math.exp %47 : vector<2x64xf32>
    %cst_24 = arith.constant 1.000000e+00 : f32
    %49 = vector.broadcast %cst_24 : f32 to vector<2x64xf32>
    %50 = arith.addf %49, %48 : vector<2x64xf32>
    %51 = arith.divf %49, %50 : vector<2x64xf32>
    %52 = math.tanh %46 : vector<2x64xf32>
    %53 = vector.extract_strided_slice %51 {offsets = [0, 0], sizes = [2, 16], strides = [1, 1]} : vector<2x64xf32> to vector<2x16xf32>
    %54 = vector.extract_strided_slice %51 {offsets = [0, 16], sizes = [2, 16], strides = [1, 1]} : vector<2x64xf32> to vector<2x16xf32>
    %55 = vector.extract_strided_slice %52 {offsets = [0, 32], sizes = [2, 16], strides = [1, 1]} : vector<2x64xf32> to vector<2x16xf32>
    %56 = vector.extract_strided_slice %51 {offsets = [0, 48], sizes = [2, 16], strides = [1, 1]} : vector<2x64xf32> to vector<2x16xf32>
    %57 = arith.mulf %54, %40 : vector<2x16xf32>
    %58 = arith.mulf %53, %55 : vector<2x16xf32>
    %59 = arith.addf %57, %58 : vector<2x16xf32>
    %60 = math.tanh %59 : vector<2x16xf32>
    %61 = arith.mulf %56, %60 : vector<2x16xf32>
    %62 = vector.extract_strided_slice %20 {offsets = [0, 2, 0], sizes = [2, 1, 64], strides = [1, 1, 1]} : vector<2x8x64xf32> to vector<2x1x64xf32>
    %63 = vector.shape_cast %62 : vector<2x1x64xf32> to vector<2x64xf32>
    %cst_25 = arith.constant dense<0.000000e+00> : vector<2x64xf32>
    %64 = tpu.matmul %61, %21, %cst_25 {dimension_numbers = #tpu.dot_dimension_numbers<[1], [0], [0], [1], [0, 0, 1, 1], [], []>} : vector<2x16xf32>, vector<16x64xf32>, vector<2x64xf32> -> vector<2x64xf32>
    %65 = arith.addf %63, %64 : vector<2x64xf32>
    %66 = arith.negf %65 : vector<2x64xf32>
    %67 = math.exp %66 : vector<2x64xf32>
    %cst_26 = arith.constant 1.000000e+00 : f32
    %68 = vector.broadcast %cst_26 : f32 to vector<2x64xf32>
    %69 = arith.addf %68, %67 : vector<2x64xf32>
    %70 = arith.divf %68, %69 : vector<2x64xf32>
    %71 = math.tanh %65 : vector<2x64xf32>
    %72 = vector.extract_strided_slice %70 {offsets = [0, 0], sizes = [2, 16], strides = [1, 1]} : vector<2x64xf32> to vector<2x16xf32>
    %73 = vector.extract_strided_slice %70 {offsets = [0, 16], sizes = [2, 16], strides = [1, 1]} : vector<2x64xf32> to vector<2x16xf32>
    %74 = vector.extract_strided_slice %71 {offsets = [0, 32], sizes = [2, 16], strides = [1, 1]} : vector<2x64xf32> to vector<2x16xf32>
    %75 = vector.extract_strided_slice %70 {offsets = [0, 48], sizes = [2, 16], strides = [1, 1]} : vector<2x64xf32> to vector<2x16xf32>
    %76 = arith.mulf %73, %59 : vector<2x16xf32>
    %77 = arith.mulf %72, %74 : vector<2x16xf32>
    %78 = arith.addf %76, %77 : vector<2x16xf32>
    %79 = math.tanh %78 : vector<2x16xf32>
    %80 = arith.mulf %75, %79 : vector<2x16xf32>
    %81 = vector.extract_strided_slice %20 {offsets = [0, 3, 0], sizes = [2, 1, 64], strides = [1, 1, 1]} : vector<2x8x64xf32> to vector<2x1x64xf32>
    %82 = vector.shape_cast %81 : vector<2x1x64xf32> to vector<2x64xf32>
    %cst_27 = arith.constant dense<0.000000e+00> : vector<2x64xf32>
    %83 = tpu.matmul %80, %21, %cst_27 {dimension_numbers = #tpu.dot_dimension_numbers<[1], [0], [0], [1], [0, 0, 1, 1], [], []>} : vector<2x16xf32>, vector<16x64xf32>, vector<2x64xf32> -> vector<2x64xf32>
    %84 = arith.addf %82, %83 : vector<2x64xf32>
    %85 = arith.negf %84 : vector<2x64xf32>
    %86 = math.exp %85 : vector<2x64xf32>
    %cst_28 = arith.constant 1.000000e+00 : f32
    %87 = vector.broadcast %cst_28 : f32 to vector<2x64xf32>
    %88 = arith.addf %87, %86 : vector<2x64xf32>
    %89 = arith.divf %87, %88 : vector<2x64xf32>
    %90 = math.tanh %84 : vector<2x64xf32>
    %91 = vector.extract_strided_slice %89 {offsets = [0, 0], sizes = [2, 16], strides = [1, 1]} : vector<2x64xf32> to vector<2x16xf32>
    %92 = vector.extract_strided_slice %89 {offsets = [0, 16], sizes = [2, 16], strides = [1, 1]} : vector<2x64xf32> to vector<2x16xf32>
    %93 = vector.extract_strided_slice %90 {offsets = [0, 32], sizes = [2, 16], strides = [1, 1]} : vector<2x64xf32> to vector<2x16xf32>
    %94 = vector.extract_strided_slice %89 {offsets = [0, 48], sizes = [2, 16], strides = [1, 1]} : vector<2x64xf32> to vector<2x16xf32>
    %95 = arith.mulf %92, %78 : vector<2x16xf32>
    %96 = arith.mulf %91, %93 : vector<2x16xf32>
    %97 = arith.addf %95, %96 : vector<2x16xf32>
    %98 = math.tanh %97 : vector<2x16xf32>
    %99 = arith.mulf %94, %98 : vector<2x16xf32>
    %100 = vector.extract_strided_slice %20 {offsets = [0, 4, 0], sizes = [2, 1, 64], strides = [1, 1, 1]} : vector<2x8x64xf32> to vector<2x1x64xf32>
    %101 = vector.shape_cast %100 : vector<2x1x64xf32> to vector<2x64xf32>
    %cst_29 = arith.constant dense<0.000000e+00> : vector<2x64xf32>
    %102 = tpu.matmul %99, %21, %cst_29 {dimension_numbers = #tpu.dot_dimension_numbers<[1], [0], [0], [1], [0, 0, 1, 1], [], []>} : vector<2x16xf32>, vector<16x64xf32>, vector<2x64xf32> -> vector<2x64xf32>
    %103 = arith.addf %101, %102 : vector<2x64xf32>
    %104 = arith.negf %103 : vector<2x64xf32>
    %105 = math.exp %104 : vector<2x64xf32>
    %cst_30 = arith.constant 1.000000e+00 : f32
    %106 = vector.broadcast %cst_30 : f32 to vector<2x64xf32>
    %107 = arith.addf %106, %105 : vector<2x64xf32>
    %108 = arith.divf %106, %107 : vector<2x64xf32>
    %109 = math.tanh %103 : vector<2x64xf32>
    %110 = vector.extract_strided_slice %108 {offsets = [0, 0], sizes = [2, 16], strides = [1, 1]} : vector<2x64xf32> to vector<2x16xf32>
    %111 = vector.extract_strided_slice %108 {offsets = [0, 16], sizes = [2, 16], strides = [1, 1]} : vector<2x64xf32> to vector<2x16xf32>
    %112 = vector.extract_strided_slice %109 {offsets = [0, 32], sizes = [2, 16], strides = [1, 1]} : vector<2x64xf32> to vector<2x16xf32>
    %113 = vector.extract_strided_slice %108 {offsets = [0, 48], sizes = [2, 16], strides = [1, 1]} : vector<2x64xf32> to vector<2x16xf32>
    %114 = arith.mulf %111, %97 : vector<2x16xf32>
    %115 = arith.mulf %110, %112 : vector<2x16xf32>
    %116 = arith.addf %114, %115 : vector<2x16xf32>
    %117 = math.tanh %116 : vector<2x16xf32>
    %118 = arith.mulf %113, %117 : vector<2x16xf32>
    %119 = vector.extract_strided_slice %20 {offsets = [0, 5, 0], sizes = [2, 1, 64], strides = [1, 1, 1]} : vector<2x8x64xf32> to vector<2x1x64xf32>
    %120 = vector.shape_cast %119 : vector<2x1x64xf32> to vector<2x64xf32>
    %cst_31 = arith.constant dense<0.000000e+00> : vector<2x64xf32>
    %121 = tpu.matmul %118, %21, %cst_31 {dimension_numbers = #tpu.dot_dimension_numbers<[1], [0], [0], [1], [0, 0, 1, 1], [], []>} : vector<2x16xf32>, vector<16x64xf32>, vector<2x64xf32> -> vector<2x64xf32>
    %122 = arith.addf %120, %121 : vector<2x64xf32>
    %123 = arith.negf %122 : vector<2x64xf32>
    %124 = math.exp %123 : vector<2x64xf32>
    %cst_32 = arith.constant 1.000000e+00 : f32
    %125 = vector.broadcast %cst_32 : f32 to vector<2x64xf32>
    %126 = arith.addf %125, %124 : vector<2x64xf32>
    %127 = arith.divf %125, %126 : vector<2x64xf32>
    %128 = math.tanh %122 : vector<2x64xf32>
    %129 = vector.extract_strided_slice %127 {offsets = [0, 0], sizes = [2, 16], strides = [1, 1]} : vector<2x64xf32> to vector<2x16xf32>
    %130 = vector.extract_strided_slice %127 {offsets = [0, 16], sizes = [2, 16], strides = [1, 1]} : vector<2x64xf32> to vector<2x16xf32>
    %131 = vector.extract_strided_slice %128 {offsets = [0, 32], sizes = [2, 16], strides = [1, 1]} : vector<2x64xf32> to vector<2x16xf32>
    %132 = vector.extract_strided_slice %127 {offsets = [0, 48], sizes = [2, 16], strides = [1, 1]} : vector<2x64xf32> to vector<2x16xf32>
    %133 = arith.mulf %130, %116 : vector<2x16xf32>
    %134 = arith.mulf %129, %131 : vector<2x16xf32>
    %135 = arith.addf %133, %134 : vector<2x16xf32>
    %136 = math.tanh %135 : vector<2x16xf32>
    %137 = arith.mulf %132, %136 : vector<2x16xf32>
    %138 = vector.extract_strided_slice %20 {offsets = [0, 6, 0], sizes = [2, 1, 64], strides = [1, 1, 1]} : vector<2x8x64xf32> to vector<2x1x64xf32>
    %139 = vector.shape_cast %138 : vector<2x1x64xf32> to vector<2x64xf32>
    %cst_33 = arith.constant dense<0.000000e+00> : vector<2x64xf32>
    %140 = tpu.matmul %137, %21, %cst_33 {dimension_numbers = #tpu.dot_dimension_numbers<[1], [0], [0], [1], [0, 0, 1, 1], [], []>} : vector<2x16xf32>, vector<16x64xf32>, vector<2x64xf32> -> vector<2x64xf32>
    %141 = arith.addf %139, %140 : vector<2x64xf32>
    %142 = arith.negf %141 : vector<2x64xf32>
    %143 = math.exp %142 : vector<2x64xf32>
    %cst_34 = arith.constant 1.000000e+00 : f32
    %144 = vector.broadcast %cst_34 : f32 to vector<2x64xf32>
    %145 = arith.addf %144, %143 : vector<2x64xf32>
    %146 = arith.divf %144, %145 : vector<2x64xf32>
    %147 = math.tanh %141 : vector<2x64xf32>
    %148 = vector.extract_strided_slice %146 {offsets = [0, 0], sizes = [2, 16], strides = [1, 1]} : vector<2x64xf32> to vector<2x16xf32>
    %149 = vector.extract_strided_slice %146 {offsets = [0, 16], sizes = [2, 16], strides = [1, 1]} : vector<2x64xf32> to vector<2x16xf32>
    %150 = vector.extract_strided_slice %147 {offsets = [0, 32], sizes = [2, 16], strides = [1, 1]} : vector<2x64xf32> to vector<2x16xf32>
    %151 = vector.extract_strided_slice %146 {offsets = [0, 48], sizes = [2, 16], strides = [1, 1]} : vector<2x64xf32> to vector<2x16xf32>
    %152 = arith.mulf %149, %135 : vector<2x16xf32>
    %153 = arith.mulf %148, %150 : vector<2x16xf32>
    %154 = arith.addf %152, %153 : vector<2x16xf32>
    %155 = math.tanh %154 : vector<2x16xf32>
    %156 = arith.mulf %151, %155 : vector<2x16xf32>
    %157 = vector.extract_strided_slice %20 {offsets = [0, 7, 0], sizes = [2, 1, 64], strides = [1, 1, 1]} : vector<2x8x64xf32> to vector<2x1x64xf32>
    %158 = vector.shape_cast %157 : vector<2x1x64xf32> to vector<2x64xf32>
    %cst_35 = arith.constant dense<0.000000e+00> : vector<2x64xf32>
    %159 = tpu.matmul %156, %21, %cst_35 {dimension_numbers = #tpu.dot_dimension_numbers<[1], [0], [0], [1], [0, 0, 1, 1], [], []>} : vector<2x16xf32>, vector<16x64xf32>, vector<2x64xf32> -> vector<2x64xf32>
    %160 = arith.addf %158, %159 : vector<2x64xf32>
    %161 = arith.negf %160 : vector<2x64xf32>
    %162 = math.exp %161 : vector<2x64xf32>
    %cst_36 = arith.constant 1.000000e+00 : f32
    %163 = vector.broadcast %cst_36 : f32 to vector<2x64xf32>
    %164 = arith.addf %163, %162 : vector<2x64xf32>
    %165 = arith.divf %163, %164 : vector<2x64xf32>
    %166 = math.tanh %160 : vector<2x64xf32>
    %167 = vector.extract_strided_slice %165 {offsets = [0, 0], sizes = [2, 16], strides = [1, 1]} : vector<2x64xf32> to vector<2x16xf32>
    %168 = vector.extract_strided_slice %165 {offsets = [0, 16], sizes = [2, 16], strides = [1, 1]} : vector<2x64xf32> to vector<2x16xf32>
    %169 = vector.extract_strided_slice %166 {offsets = [0, 32], sizes = [2, 16], strides = [1, 1]} : vector<2x64xf32> to vector<2x16xf32>
    %170 = vector.extract_strided_slice %165 {offsets = [0, 48], sizes = [2, 16], strides = [1, 1]} : vector<2x64xf32> to vector<2x16xf32>
    %171 = arith.mulf %168, %154 : vector<2x16xf32>
    %172 = arith.mulf %167, %169 : vector<2x16xf32>
    %173 = arith.addf %171, %172 : vector<2x16xf32>
    %174 = math.tanh %173 : vector<2x16xf32>
    %175 = arith.mulf %170, %174 : vector<2x16xf32>
    %176 = tpu.concatenate %42, %61, %80, %99, %118, %137, %156, %175 in 1 : vector<2x16xf32>, vector<2x16xf32>, vector<2x16xf32>, vector<2x16xf32>, vector<2x16xf32>, vector<2x16xf32>, vector<2x16xf32>, vector<2x16xf32> -> vector<2x128xf32>
    %c0_37 = arith.constant 0 : index
    %c0_38 = arith.constant 0 : index
    %177 = vector.load %arg8[%c0_37, %c0_38] : memref<2x128xf32, #tpu.memory_space<vmem>>, vector<2x128xf32>
    tpu.vector_store %arg8[%c0_37, %c0_38], %176 {strides = array<i32>} : memref<2x128xf32, #tpu.memory_space<vmem>>, vector<2x128xf32>,
    %c0_39 = arith.constant 0 : index
    %c0_40 = arith.constant 0 : index
    %178 = vector.load %arg9[%c0_39, %c0_40] : memref<2x16xf32, #tpu.memory_space<vmem>>, vector<2x16xf32>
    tpu.vector_store %arg9[%c0_39, %c0_40], %175 {strides = array<i32>} : memref<2x16xf32, #tpu.memory_space<vmem>>, vector<2x16xf32>,
    %c0_41 = arith.constant 0 : index
    %c0_42 = arith.constant 0 : index
    %179 = vector.load %arg10[%c0_41, %c0_42] : memref<2x16xf32, #tpu.memory_space<vmem>>, vector<2x16xf32>
    tpu.vector_store %arg10[%c0_41, %c0_42], %173 {strides = array<i32>} : memref<2x16xf32, #tpu.memory_space<vmem>>, vector<2x16xf32>,
    return
  }
}

</mosaic_0001>

<bundles_post_ra>
// kernel: stdl_forward.1
= control target key start
LH: loop header
LB: loop body
LE: loop exit
PB: predicated region body
PF: predicated region fallthrough
CT: control target
= control target key end

     0   :  { %16 = vsyncpa [#allocation3], 0  ;;  %s2276_s0 = inlined_call_operand.hbm [shape: f32[16,32], index: 0, kind: input, shape index: {}]   ;;  %s2277_s1 = inlined_call_operand.vmem [shape: f32[32,24], index: 1, kind: input, shape index: {}]   ;;  %s2278_s2 = inlined_call_operand.hbm [shape: f32[1,24], index: 2, kind: input, shape index: {}]   ;;  %s2279_s3 = inlined_call_operand.vmem [shape: f32[24,24], index: 3, kind: input, shape index: {}]   ;;  %s2280_s4 = inlined_call_operand.hbm [shape: f32[1,24], index: 4, kind: input, shape index: {}]   ;;  %s2281_s5 = inlined_call_operand.vmem [shape: f32[24,64], index: 5, kind: input, shape index: {}]   ;;  %s2282_s6 = inlined_call_operand.vmem [shape: f32[16,64], index: 6, kind: input, shape index: {}]   ;;  %s2283_s7 = inlined_call_operand.vmem [shape: f32[1,64], index: 7, kind: input, shape index: {}]   ;;  %s2284_s8 = inlined_call_operand.vmem [shape: f32[2,128], index: 8, kind: output, shape index: {0}]   ;;  %s2285_s9 = inlined_call_operand.hbm [shape: f32[2,16], index: 9, kind: output, shape index: {1}]   ;;  %s2286_s10 = inlined_call_operand.hbm [shape: f32[2,16], index: 10, kind: output, shape index: {2}]  }
   0x1   :  { %17 = vsyncpa [#allocation6], 0 }
   0x2   :  { %18 = vsyncpa [#allocation4], 0 }
   0x3   :  { %19 = vsyncpa [#allocation10], 0  ;;  %s1964_s13 = smov [#allocation5]   ;;  %s1965_s15 = smov [#allocation2]  }
   0x4   :  { %s40_s14 = sshll.u32 %s1964_s13, 4  ;;  %s25_s16 = sshll.u32 %s1965_s15, 4  ;;  %s41_s14 = int_to_ptr.vmem [resolvable:$true] %s40_s14  ;;  %s26_s16 = int_to_ptr.vmem [resolvable:$true] %s25_s16 }
   0x5   :  { %s1864_s17 = scalar_lea.vmem %s41_s14, 16  ;;  %s1868_s18 = scalar_lea.vmem %s41_s14, 32 }
   0x6   :  { %p1865_p0 = scmp.ne.s32.totalorder %s41_s14, %s1864_s17  ;;  %p1869_p1 = scmp.lt.s32.totalorder %s41_s14, %s41_s14 }
   0x7   :  { %p1870_p2 = scmp.lt.s32.totalorder %s1868_s18, %s1864_s17 }
   0x9   :  { %p1871_p3 = por %p1870_p2, %p1869_p1 }
   0xb   :  { %p1872_p4 = pnand %p1871_p3, %p1865_p0 }
   0xd   :  { %1875 = shalt.err (!%p1872_p4)
}
   0xe   :  { %43 = dma.hbm_to_vmem [thread:$0]  %s2278_s2, 16, %s41_s14, [#allocation6]  }
   0xf   :  { %s1884_s21 = scalar_lea.vmem %s26_s16, 256  ;;  %p1889_p6 = scmp.lt.s32.totalorder %s26_s16, %s26_s16 }
  0x10   :  { %p1885_p5 = scmp.ne.s32.totalorder %s26_s16, %s1884_s21  ;;  %p1890_p7 = scmp.lt.s32.totalorder %s1884_s21, %s1884_s21 }
  0x12   :  { %p1891_p8 = por %p1890_p7, %p1889_p6 }
  0x14   :  { %p1892_p9 = pnand %p1891_p8, %p1885_p5 }
  0x16   :  { %1895 = shalt.err (!%p1892_p9)
}
  0x17   :  { %s1966_s22 = smov 128   ;;  %s1967_s23 = smov 8  }
  0x18   :  { %31 = dma.hbm_to_vmem [thread:$0]  %s2276_s0, 256, %s26_s16, [#allocation3], %s1966_s22, %s1966_s22, %s1967_s23  }
  0x19   :  { %s1968_s26 = smov [#allocation7]  }
  0x1a   :  { %s52_s27 = sshll.u32 %s1968_s26, 4  ;;  %s53_s27 = int_to_ptr.vmem [resolvable:$true] %s52_s27 }
  0x1b   :  { %s1904_s28 = scalar_lea.vmem %s53_s27, 16  ;;  %s1908_s29 = scalar_lea.vmem %s53_s27, 32 }
  0x1c   :  { %p1905_p10 = scmp.ne.s32.totalorder %s53_s27, %s1904_s28  ;;  %p1909_p11 = scmp.lt.s32.totalorder %s53_s27, %s53_s27 }
  0x1d   :  { %p1910_p12 = scmp.lt.s32.totalorder %s1908_s29, %s1904_s28 }
  0x1f   :  { %p1911_p13 = por %p1910_p12, %p1909_p11 }
  0x21   :  { %p1912_p0 = pnand %p1911_p13, %p1905_p10 }
  0x23   :  { %1915 = shalt.err (!%p1912_p0)
}
  0x24   :  { %55 = dma.hbm_to_vmem [thread:$0]  %s2280_s4, 16, %s53_s27, [#allocation6]  }
  0x25   :  { %1956 = dma.done.wait [#allocation3], 256  }
  0x26   :  { %1957 = vsyncadd [#allocation3], 4294967040 }
  0x27   :  { %1958 = dma.done.wait [#allocation6], 32  }
  0x28   :  { %1959 = vsyncadd [#allocation6], 4294967264  ;;  %vm84_vm0 = vcmask 261120   ;;  %v76_v0 = vld [vmem:[%s2277_s1 + $0x18] sm:$0xff]  ;;  %v75_v1 = vld [vmem:[%s2277_s1 + $0x10] sm:$0xff]  ;;  %vm178_vm1 = vcmask 195584  }
  0x29   :  { %1627 = vmatprep.subr.mxu0 %v76_v0  ;;  %v71_v2 = vld [vmem:[#allocation2] sm:$0xff]  ;;  %v74_v3 = vld [vmem:[%s2277_s1 + $0x8] sm:$0xff]  ;;  %v170_v6 = vld [vmem:[%s2279_s3 + $0x10] sm:$0xff]  ;;  %v1969_v17 = vmov 0.0   ;;  %vm1970_vm2 = vmmov 0   ;;  %s1971_s30 = smov 96  }
  0x2a   :  { %1628 = vmatpush3.msra.mxu0 %v76_v0  ;;  %1635 = vmatprep.mubr.msk.f32.mxu0 %vm84_vm0, %v71_v2  ;;  %v73_v4 = vld [vmem:[%s2277_s1] sm:$0xff]  ;;  %v72_v5 = vld [vmem:[#allocation2 + $0x8] sm:$0xff]  ;;  %v1555_v9 = vld [vmem:[#allocation5] ss:$0 sm:$0xff]  ;;  %s1973_s0 = smov 32   ;;  %vm486_vm3 = vcmask 1041409  }
  0x2b   :  { %1629 = vmatprep.subr.mxu0 %v75_v1  ;;  %1638 = vmatprep.subr.mxu1 %v170_v6  ;;  %v169_v7 = vld [vmem:[%s2279_s3 + $0x8] sm:$0xff]  ;;  %v168_v8 = vld [vmem:[%s2279_s3] sm:$0xff]  ;;  %v264_v16 = vld [vmem:[%s2281_s5 + $0x10] sm:$0xff]  ;;  %s1974_s11 = smov 80   ;;  %vm355_vm4 = vcmask 130048   ;;  %s1975_s12 = smov 112  }
  0x2c   :  { %1630 = vmatpush3.msra.mxu0 %v75_v1  ;;  %1639 = vmatpush3.msra.mxu1 %v170_v6  ;;  %v2076_v18 = vld [vmem:[%s2282_s6 + $0x8] sm:$0xff]  ;;  %v2086_v20 = vld [vmem:[%s2282_s6] sm:$0xff]  ;;  %v1558_v22 = vld [vmem:[#allocation7] ss:$0 sm:$0xff]  ;;  %s1976_s13 = smov 48   ;;  %s1977_s14 = smov 64  }
  0x2d   :  { %1631 = vmatprep.subr.mxu0 %v74_v3  ;;  %1640 = vmatprep.subr.mxu1 %v169_v7  ;;  %v263_v19 = vld [vmem:[%s2281_s5 + $0x8] sm:$0xff]  ;;  %v262_v21 = vld [vmem:[%s2281_s5] sm:$0xff]  ;;  %vm1488_vm5 = vcmask 392192   ;;  %vm1506_vm6 = vcmask 130055   ;;  %s1978_s15 = smov [#allocation8]   ;;  %vm1490_vm7 = vcmask 523264  }
  0x2e   :  { %1632 = vmatpush3.msra.mxu0 %v74_v3  ;;  %1641 = vmatpush3.msra.mxu1 %v169_v7  ;;  %v1561_v31 = vld [vmem:[%s2283_s7] ss:$0 sm:$0xff]  ;;  %s1972_s7 = smov 16   ;;  %s1529_s4 = sshll.u32 %s1978_s15, 4  ;;  %vm1508_vm8 = vcmask 122880   ;;  %vm1492_vm9 = vcmask 654336   ;;  %s1530_s4 = int_to_ptr.vmem [resolvable:$true] %s1529_s4 }
  0x2f   :  { %1633 = vmatprep.subr.mxu0 %v73_v4  ;;  %1642 = vmatprep.subr.mxu1 %v168_v8  ;;  %vm1494_vm10 = vcmask 785408   ;;  %vm1496_vm11 = vcmask 916480   ;;  %s1916_s16 = scalar_lea.vmem %s1530_s4, 32  ;;  %p1921_p2 = scmp.lt.s32.totalorder %s1530_s4, %s1530_s4 }
  0x30   :  { %1634 = vmatpush3.msra.mxu0 %v73_v4  ;;  %1643 = vmatpush3.msra.mxu1 %v168_v8  ;;  %p1917_p1 = scmp.ne.s32.totalorder %s1530_s4, %s1916_s16  ;;  %p1922_p3 = scmp.lt.s32.totalorder %s1916_s16, %s1916_s16 }
  0x31   :  { %1636 = vmatmul.mubr.msk.f32.vlgmr.msra.gmra.mxu0 %vm84_vm0, %v72_v5  ;;  %1647 = vmatprep.subr.mxu1 %v264_v16 }
  0x32   :  { %1656 = vmatprep.subr.mxu0 %v1969_v17  ;;  %1660 = vmatprep.mubr.msk.f32.mxu0 %vm1970_vm2, %v1969_v17  ;;  %p1923_p4 = por %p1922_p3, %p1921_p2 }
  0x33   :  { %1657 = vmatpush3.msra.mxu0 %v2076_v18 }
  0x34   :  { %1658 = vmatprep.subr.mxu0 %v1969_v17  ;;  %p1924_p5 = pnand %p1923_p4, %p1917_p1 }
  0x35   :  { %1659 = vmatpush3.msra.mxu0 %v2086_v20 }
  0x36   :  { %1661 = vmatmul.mubr.f32.vlgmr.msra.gmra.mxu0 %v1969_v17  ;;  %1663 = vmatprep.subr.mxu0 %v1969_v17 }
  0x37   :  { %1667 = vmatprep.mubr.msk.f32.mxu0 %vm1970_vm2, %v1969_v17  ;;  %1664 = vmatpush3.msra.mxu0 %v2076_v18 }
  0x38   :  { %1665 = vmatprep.subr.mxu0 %v1969_v17 }
  0x39   :  { %1666 = vmatpush3.msra.mxu0 %v2086_v20 }
  0x3a   :  { %1677 = vmatprep.subr.mxu0 %v1969_v17 }
  0xf1   :  { %v1637_v10 = vpop.f32.mrf.mxu0 }
  0xf2   :  { %v163_v11 = vadd.f32 %v1637_v10, %v1555_v9 }
  0xf3   :  { %v157_v12 = vpop.f32.mrf.mxu0 }
  0xf4   :  { %v158_v13 = vadd.f32 %v1555_v9, %v157_v12  ;;  %v167_v15 = vmax.f32 %v163_v11, 0.0 }
  0xf6   :  { %v166_v14 = vmax.f32 %v158_v13, 0.0  ;;  %v425_v29 = vpop.f32.mrf.mxu0 }
  0xf7   :  { %v430_v32 = vrot.slane %v425_v29, 1 }
  0xf8   :  { %1644 = vmatprep.mubr.msk.f32.mxu1 %vm178_vm1, %v166_v14  ;;  %v1662_v30 = vpop.f32.mrf.mxu0 }
  0xf9   :  { %1645 = vmatmul.mubr.msk.f32.vlgmr.msra.gmra.mxu1 %vm178_vm1, %v167_v15 }
  0xfa   :  { %1648 = vmatpush3.msra.mxu1 %v264_v16 }
  0xfb   :  { %1649 = vmatprep.subr.mxu1 %v263_v19 }
  0xfc   :  { %1650 = vmatpush3.msra.mxu1 %v263_v19 }
  0xfd   :  { %1651 = vmatprep.subr.mxu1 %v262_v21 }
  0xfe   :  { %1652 = vmatpush3.msra.mxu1 %v262_v21 }
  0xff   :  { %1670 = vmatprep.subr.mxu1 %v1969_v17 }
 0x1b9   :  { %v1646_v23 = vpop.f32.mrf.mxu1 }
 0x1ba   :  { %v257_v24 = vadd.f32 %v1646_v23, %v1558_v22 }
 0x1bb   :  { %v251_v25 = vpop.f32.mrf.mxu1 }
 0x1bc   :  { %v252_v26 = vadd.f32 %v1558_v22, %v251_v25  ;;  %v261_v28 = vmax.f32 %v257_v24, 0.0 }
 0x1be   :  { %v260_v27 = vmax.f32 %v252_v26, 0.0 }
 0x1c0   :  { %1653 = vmatprep.mubr.msk.f32.mxu1 %vm178_vm1, %v260_v27 }
 0x1c1   :  { %1654 = vmatmul.mubr.msk.f32.vlgmr.msra.gmra.mxu1 %vm178_vm1, %v261_v28 }
 0x1c2   :  { %1671 = vmatpush3.msra.mxu1 %v2076_v18  ;;  %1674 = vmatprep.mubr.msk.f32.mxu1 %vm1970_vm2, %v1969_v17 }
 0x1c3   :  { %1672 = vmatprep.subr.mxu1 %v1969_v17 }
 0x1c4   :  { %1673 = vmatpush3.msra.mxu1 %v2086_v20 }
 0x1c5   :  { %1684 = vmatprep.subr.mxu1 %v1969_v17 }
 0x281   :  { %v1655_v33 = vpop.f32.mrf.mxu1 }
 0x282   :  { %v2114_v34 = vadd.f32 %v1655_v33, %v1561_v31 }
 0x283   :  { %v344_v35 = vpop.f32.mrf.mxu1 }
 0x284   :  { %v2116_v36 = vadd.f32 %v1561_v31, %v344_v35  ;;  %v434_v37 = vadd.f32 %v430_v32, %v2114_v34 }
 0x286   :  { %v433_v38 = vadd.f32 %v425_v29, %v2116_v36  ;;  %1728 = vtanh.f32 %v434_v37  ;;  %v1565_v41 = vmul.f32 -1.442695, %v434_v37 }
 0x288   :  { %1730 = vtanh.f32 %v433_v38  ;;  %v1564_v42 = vmul.f32 -1.442695, %v433_v38 }
 0x289   :  { %1732 = vpow2.f32 %v1565_v41 }
 0x28a   :  { %1734 = vpow2.f32 %v1564_v42 }
 0x293   :  { %v1729_v39 = vpop.eup %1728 }
 0x294   :  { %455 = vrot.lane.b32.xlu0 %v1729_v39, %s1971_s30 }
 0x295   :  { %v1731_v40 = vpop.eup %1730 }
 0x296   :  { %v1733_v43 = vpop.eup %1732 }
 0x297   :  { %v442_v44 = vadd.f32 1.0, %v1733_v43  ;;  %v1735_v45 = vpop.eup %1734 }
 0x298   :  { %453 = vrot.lane.b32.xlu0 %v1731_v40, %s1971_s30  ;;  %v441_v46 = vadd.f32 1.0, %v1735_v45 }
 0x299   :  { %1736 = vrcp.f32 %v442_v44 }
 0x29a   :  { %1738 = vrcp.f32 %v441_v46 }
 0x2a6   :  { %v1737_v47 = vpop.eup %1736 }
 0x2a7   :  { %v1739_v50 = vpop.eup %1738  ;;  %v450_v53 = vmul.f32 0.0, %v1737_v47 }
 0x2a8   :  { %v449_v56 = vmul.f32 0.0, %v1739_v50 }
 0x306   :  { %v456_v48 = vpop.permute.xlu0 %455 }
 0x307   :  { %v460_v49 = vmul.f32 %v1737_v47, %v456_v48 }
 0x309   :  { %465 = vrot.lane.b32.xlu1 %v460_v49, %s1972_s7 }
 0x30a   :  { %v454_v51 = vpop.permute.xlu0 %453 }
 0x30b   :  { %v459_v52 = vmul.f32 %v1739_v50, %v454_v51 }
 0x30d   :  { %463 = vrot.lane.b32.xlu1 %v459_v52, %s1972_s7 }
 0x37b   :  { %v466_v54 = vpop.permute.xlu1 %465 }
 0x37c   :  { %v470_v55 = vadd.f32 %v466_v54, %v450_v53 }
 0x37e   :  { %1740 = vtanh.f32 %v470_v55  ;;  %v585_v26 = vrot.slane %v470_v55, 7 }
 0x37f   :  { %v464_v57 = vpop.permute.xlu1 %463 }
 0x380   :  { %v469_v58 = vadd.f32 %v464_v57, %v449_v56 }
 0x382   :  { %1742 = vtanh.f32 %v469_v58  ;;  %v584_v28 = vrot.slane %v469_v58, 7 }
 0x38b   :  { %v1741_v59 = vpop.eup %1740 }
 0x38c   :  { %477 = vrot.lane.b32.xlu0 %v1741_v59, %s1973_s0 }
 0x38f   :  { %v1743_v60 = vpop.eup %1742 }
 0x390   :  { %475 = vrot.lane.b32.xlu1 %v1743_v60, %s1973_s0 }
 0x3fe   :  { %v478_v61 = vpop.permute.xlu0 %477 }
 0x3ff   :  { %v482_v62 = vmul.f32 %v1737_v47, %v478_v61 }
 0x401   :  { %v485_v0 = vrot.slane %v482_v62, 7 }
 0x402   :  { %v476_v63 = vpop.permute.xlu1 %475 }
 0x403   :  { %v481_v1 = vmul.f32 %v1739_v50, %v476_v63 }
 0x405   :  { %v487_v2 = vsel %vm486_vm3, %v485_v0, %v481_v1 }
 0x406   :  { %488 = vrot.lane.b32.xlu0 %v487_v2, %s1974_s11 }
 0x478   :  { %v2128_v3 = vpop.permute.xlu0 %488 }
 0x479   :  { %1668 = vmatmul.mubr.msk.f32.vlgmr.msra.gmra.mxu0 %vm355_vm4, %v2128_v3 }
 0x47a   :  { %1678 = vmatpush3.msra.mxu0 %v2076_v18  ;;  %1681 = vmatprep.mubr.msk.f32.mxu0 %vm1970_vm2, %v1969_v17 }
 0x47b   :  { %1679 = vmatprep.subr.mxu0 %v1969_v17 }
 0x47c   :  { %1680 = vmatpush3.msra.mxu0 %v2086_v20 }
 0x47d   :  { %1691 = vmatprep.subr.mxu0 %v1969_v17 }
 0x539   :  { %v558_v4 = vpop.f32.mrf.mxu0 }
 0x53a   :  { %v563_v5 = vrot.slane %v558_v4, 7  ;;  %v567_v6 = vadd.f32 %v558_v4, %v2114_v34 }
 0x53b   :  { %v1669_v7 = vpop.f32.mrf.mxu0 }
 0x53c   :  { %v566_v8 = vadd.f32 %v563_v5, %v2116_v36  ;;  %1744 = vtanh.f32 %v567_v6  ;;  %v1568_v11 = vmul.f32 -1.442695, %v567_v6 }
 0x53e   :  { %1746 = vtanh.f32 %v566_v8  ;;  %v1567_v12 = vmul.f32 -1.442695, %v566_v8 }
 0x53f   :  { %1748 = vpow2.f32 %v1568_v11 }
 0x540   :  { %1750 = vpow2.f32 %v1567_v12 }
 0x549   :  { %v1745_v9 = vpop.eup %1744 }
 0x54a   :  { %594 = vrot.lane.b32.xlu0 %v1745_v9, %s1971_s30 }
 0x54b   :  { %v1747_v10 = vpop.eup %1746 }
 0x54c   :  { %592 = vrot.lane.b32.xlu1 %v1747_v10, %s1971_s30  ;;  %v1749_v13 = vpop.eup %1748 }
 0x54d   :  { %v1751_v14 = vpop.eup %1750  ;;  %v575_v15 = vadd.f32 1.0, %v1749_v13 }
 0x54e   :  { %v574_v16 = vadd.f32 1.0, %v1751_v14 }
 0x54f   :  { %1752 = vrcp.f32 %v575_v15 }
 0x550   :  { %1754 = vrcp.f32 %v574_v16 }
 0x55c   :  { %v1753_v19 = vpop.eup %1752 }
 0x55d   :  { %v1755_v23 = vpop.eup %1754  ;;  %v589_v27 = vmul.f32 %v1753_v19, %v585_v26 }
 0x55e   :  { %v588_v31 = vmul.f32 %v1755_v23, %v584_v28 }
 0x5bc   :  { %v595_v21 = vpop.permute.xlu0 %594 }
 0x5bd   :  { %v599_v22 = vmul.f32 %v1753_v19, %v595_v21 }
 0x5be   :  { %v593_v24 = vpop.permute.xlu1 %592 }
 0x5bf   :  { %604 = vrot.lane.b32.xlu0 %v599_v22, %s1972_s7  ;;  %v598_v25 = vmul.f32 %v1755_v23, %v593_v24 }
 0x5c1   :  { %602 = vrot.lane.b32.xlu1 %v598_v25, %s1972_s7 }
 0x631   :  { %v605_v29 = vpop.permute.xlu0 %604 }
 0x632   :  { %v609_v30 = vadd.f32 %v605_v29, %v589_v27 }
 0x633   :  { %v603_v32 = vpop.permute.xlu1 %602 }
 0x634   :  { %1756 = vtanh.f32 %v609_v30  ;;  %v608_v33 = vadd.f32 %v603_v32, %v588_v31  ;;  %v724_v2 = vrot.slane %v609_v30, 7 }
 0x636   :  { %1758 = vtanh.f32 %v608_v33  ;;  %v723_v1 = vrot.slane %v608_v33, 7 }
 0x641   :  { %v1757_v35 = vpop.eup %1756 }
 0x642   :  { %616 = vrot.lane.b32.xlu0 %v1757_v35, %s1973_s0 }
 0x643   :  { %v1759_v37 = vpop.eup %1758 }
 0x644   :  { %614 = vrot.lane.b32.xlu1 %v1759_v37, %s1973_s0 }
 0x6b4   :  { %v617_v38 = vpop.permute.xlu0 %616 }
 0x6b5   :  { %v621_v41 = vmul.f32 %v1753_v19, %v617_v38 }
 0x6b6   :  { %v615_v39 = vpop.permute.xlu1 %614 }
 0x6b7   :  { %v620_v40 = vmul.f32 %v1755_v23, %v615_v39 }
 0x6b9   :  { %v624_v42 = vrot.slane %v620_v40, 1 }
 0x6bb   :  { %v2147_v43 = vsel %vm486_vm3, %v621_v41, %v624_v42 }
 0x6bc   :  { %626 = vrot.lane.b32.xlu1 %v2147_v43, %s1974_s11 }
 0x72e   :  { %v627_v44 = vpop.permute.xlu1 %626 }
 0x72f   :  { %1675 = vmatmul.mubr.msk.f32.vlgmr.msra.gmra.mxu1 %vm355_vm4, %v627_v44 }
 0x730   :  { %1685 = vmatpush3.msra.mxu1 %v2076_v18  ;;  %1688 = vmatprep.mubr.msk.f32.mxu1 %vm1970_vm2, %v1969_v17 }
 0x731   :  { %1686 = vmatprep.subr.mxu1 %v1969_v17 }
 0x732   :  { %1687 = vmatpush3.msra.mxu1 %v2086_v20 }
 0x733   :  { %1698 = vmatprep.subr.mxu1 %v1969_v17 }
 0x7ef   :  { %v696_v45 = vpop.f32.mrf.mxu1 }
 0x7f0   :  { %v701_v46 = vrot.slane %v696_v45, 6  ;;  %v702_v47 = vrot.slane %v696_v45, 7 }
 0x7f1   :  { %v1676_v48 = vpop.f32.mrf.mxu1 }
 0x7f2   :  { %v705_v49 = vadd.f32 %v701_v46, %v2116_v36  ;;  %v706_v50 = vadd.f32 %v702_v47, %v2114_v34 }
 0x7f4   :  { %1760 = vtanh.f32 %v705_v49  ;;  %v1570_v53 = vmul.f32 -1.442695, %v705_v49  ;;  %v1571_v54 = vmul.f32 -1.442695, %v706_v50 }
 0x7f5   :  { %1762 = vtanh.f32 %v706_v50 }
 0x7f6   :  { %1764 = vpow2.f32 %v1570_v53 }
 0x7f7   :  { %1766 = vpow2.f32 %v1571_v54 }
 0x801   :  { %v1761_v51 = vpop.eup %1760 }
 0x802   :  { %v1763_v52 = vpop.eup %1762  ;;  %731 = vrot.lane.b32.xlu0 %v1761_v51, %s1971_s30 }
 0x803   :  { %733 = vrot.lane.b32.xlu1 %v1763_v52, %s1971_s30  ;;  %v1765_v55 = vpop.eup %1764 }
 0x804   :  { %v1767_v56 = vpop.eup %1766  ;;  %v713_v57 = vadd.f32 1.0, %v1765_v55 }
 0x805   :  { %v714_v58 = vadd.f32 1.0, %v1767_v56 }
 0x806   :  { %1768 = vrcp.f32 %v713_v57 }
 0x807   :  { %1770 = vrcp.f32 %v714_v58 }
 0x813   :  { %v1769_v59 = vpop.eup %1768 }
 0x814   :  { %v1771_v61 = vpop.eup %1770  ;;  %v727_v4 = vmul.f32 %v1769_v59, %v723_v1 }
 0x815   :  { %v728_v5 = vmul.f32 %v1771_v61, %v724_v2 }
 0x874   :  { %v732_v60 = vpop.permute.xlu0 %731 }
 0x875   :  { %v734_v62 = vpop.permute.xlu1 %733  ;;  %v737_v63 = vmul.f32 %v1769_v59, %v732_v60 }
 0x876   :  { %v738_v0 = vmul.f32 %v1771_v61, %v734_v62 }
 0x877   :  { %741 = vrot.lane.b32.xlu0 %v737_v63, %s1972_s7 }
 0x878   :  { %743 = vrot.lane.b32.xlu1 %v738_v0, %s1972_s7 }
 0x8e9   :  { %v742_v6 = vpop.permute.xlu0 %741 }
 0x8ea   :  { %v744_v7 = vpop.permute.xlu1 %743  ;;  %v747_v8 = vadd.f32 %v742_v6, %v727_v4 }
 0x8eb   :  { %v748_v9 = vadd.f32 %v744_v7, %v728_v5 }
 0x8ec   :  { %1772 = vtanh.f32 %v747_v8  ;;  %v863_v46 = vrot.slane %v747_v8, 7 }
 0x8ed   :  { %1774 = vtanh.f32 %v748_v9  ;;  %v864_v47 = vrot.slane %v748_v9, 7 }
 0x8f9   :  { %v1773_v10 = vpop.eup %1772 }
 0x8fa   :  { %v1775_v11 = vpop.eup %1774  ;;  %753 = vrot.lane.b32.xlu0 %v1773_v10, %s1973_s0 }
 0x8fb   :  { %755 = vrot.lane.b32.xlu1 %v1775_v11, %s1973_s0 }
 0x96c   :  { %v754_v12 = vpop.permute.xlu0 %753 }
 0x96d   :  { %v756_v13 = vpop.permute.xlu1 %755  ;;  %v759_v14 = vmul.f32 %v1769_v59, %v754_v12 }
 0x96e   :  { %v760_v15 = vmul.f32 %v1771_v61, %v756_v13 }
 0x96f   :  { %v763_v16 = vrot.slane %v759_v14, 2 }
 0x970   :  { %v764_v19 = vrot.slane %v760_v15, 1 }
 0x972   :  { %v2167_v21 = vsel %vm486_vm3, %v764_v19, %v763_v16 }
 0x973   :  { %766 = vrot.lane.b32.xlu0 %v2167_v21, %s1974_s11 }
 0x9e5   :  { %v767_v22 = vpop.permute.xlu0 %766 }
 0x9e6   :  { %1682 = vmatmul.mubr.msk.f32.vlgmr.msra.gmra.mxu0 %vm355_vm4, %v767_v22 }
 0x9e7   :  { %1692 = vmatpush3.msra.mxu0 %v2076_v18  ;;  %1695 = vmatprep.mubr.msk.f32.mxu0 %vm1970_vm2, %v1969_v17 }
 0x9e8   :  { %1693 = vmatprep.subr.mxu0 %v1969_v17 }
 0x9e9   :  { %1694 = vmatpush3.msra.mxu0 %v2086_v20 }
 0x9ea   :  { %1705 = vmatprep.subr.mxu0 %v1969_v17 }
 0xaa6   :  { %v836_v23 = vpop.f32.mrf.mxu0 }
 0xaa7   :  { %v841_v24 = vrot.slane %v836_v23, 5  ;;  %v842_v25 = vrot.slane %v836_v23, 6 }
 0xaa8   :  { %v1683_v26 = vpop.f32.mrf.mxu0 }
 0xaa9   :  { %v845_v27 = vadd.f32 %v841_v24, %v2116_v36  ;;  %v846_v28 = vadd.f32 %v842_v25, %v2114_v34 }
 0xaab   :  { %1776 = vtanh.f32 %v845_v27  ;;  %v1573_v31 = vmul.f32 -1.442695, %v845_v27  ;;  %v1574_v32 = vmul.f32 -1.442695, %v846_v28 }
 0xaac   :  { %1778 = vtanh.f32 %v846_v28 }
 0xaad   :  { %1780 = vpow2.f32 %v1573_v31 }
 0xaae   :  { %1782 = vpow2.f32 %v1574_v32 }
 0xab8   :  { %v1777_v29 = vpop.eup %1776 }
 0xab9   :  { %v1779_v30 = vpop.eup %1778  ;;  %871 = vrot.lane.b32.xlu1 %v1777_v29, %s1971_s30 }
 0xaba   :  { %873 = vrot.lane.b32.xlu0 %v1779_v30, %s1971_s30  ;;  %v1781_v33 = vpop.eup %1780 }
 0xabb   :  { %v1783_v35 = vpop.eup %1782  ;;  %v853_v37 = vadd.f32 1.0, %v1781_v33 }
 0xabc   :  { %v854_v38 = vadd.f32 1.0, %v1783_v35 }
 0xabd   :  { %1784 = vrcp.f32 %v853_v37 }
 0xabe   :  { %1786 = vrcp.f32 %v854_v38 }
 0xaca   :  { %v1785_v39 = vpop.eup %1784 }
 0xacb   :  { %v1787_v41 = vpop.eup %1786  ;;  %v867_v48 = vmul.f32 %v1785_v39, %v863_v46 }
 0xacc   :  { %v868_v49 = vmul.f32 %v1787_v41, %v864_v47 }
 0xb2b   :  { %v872_v40 = vpop.permute.xlu1 %871 }
 0xb2c   :  { %v874_v42 = vpop.permute.xlu0 %873  ;;  %v877_v44 = vmul.f32 %v1785_v39, %v872_v40 }
 0xb2d   :  { %v878_v45 = vmul.f32 %v1787_v41, %v874_v42 }
 0xb2e   :  { %881 = vrot.lane.b32.xlu1 %v877_v44, %s1972_s7 }
 0xb2f   :  { %883 = vrot.lane.b32.xlu0 %v878_v45, %s1972_s7 }
 0xba0   :  { %v882_v50 = vpop.permute.xlu1 %881 }
 0xba1   :  { %v884_v51 = vpop.permute.xlu0 %883  ;;  %v887_v52 = vadd.f32 %v882_v50, %v867_v48 }
 0xba2   :  { %v888_v53 = vadd.f32 %v884_v51, %v868_v49 }
 0xba3   :  { %1788 = vtanh.f32 %v887_v52  ;;  %v1003_v25 = vrot.slane %v887_v52, 7 }
 0xba4   :  { %1790 = vtanh.f32 %v888_v53  ;;  %v1004_v26 = vrot.slane %v888_v53, 7 }
 0xbb0   :  { %v1789_v54 = vpop.eup %1788 }
 0xbb1   :  { %v1791_v55 = vpop.eup %1790  ;;  %893 = vrot.lane.b32.xlu1 %v1789_v54, %s1973_s0 }
 0xbb2   :  { %895 = vrot.lane.b32.xlu0 %v1791_v55, %s1973_s0 }
 0xc23   :  { %v894_v56 = vpop.permute.xlu1 %893 }
 0xc24   :  { %v896_v57 = vpop.permute.xlu0 %895  ;;  %v899_v58 = vmul.f32 %v1785_v39, %v894_v56 }
 0xc25   :  { %v900_v59 = vmul.f32 %v1787_v41, %v896_v57 }
 0xc26   :  { %v903_v60 = vrot.slane %v899_v58, 3 }
 0xc27   :  { %v904_v61 = vrot.slane %v900_v59, 2 }
 0xc29   :  { %v2187_v62 = vsel %vm486_vm3, %v904_v61, %v903_v60 }
 0xc2a   :  { %906 = vrot.lane.b32.xlu1 %v2187_v62, %s1974_s11 }
 0xc9c   :  { %v907_v63 = vpop.permute.xlu1 %906 }
 0xc9d   :  { %1689 = vmatmul.mubr.msk.f32.vlgmr.msra.gmra.mxu1 %vm355_vm4, %v907_v63 }
 0xc9e   :  { %1699 = vmatpush3.msra.mxu1 %v2076_v18  ;;  %1702 = vmatprep.mubr.msk.f32.mxu1 %vm1970_vm2, %v1969_v17 }
 0xc9f   :  { %1700 = vmatprep.subr.mxu1 %v1969_v17 }
 0xca0   :  { %1701 = vmatpush3.msra.mxu1 %v2086_v20 }
 0xd5d   :  { %v976_v0 = vpop.f32.mrf.mxu1 }
 0xd5e   :  { %v981_v1 = vrot.slane %v976_v0, 4  ;;  %v982_v2 = vrot.slane %v976_v0, 5 }
 0xd5f   :  { %v1690_v4 = vpop.f32.mrf.mxu1 }
 0xd60   :  { %v985_v5 = vadd.f32 %v981_v1, %v2116_v36  ;;  %v986_v6 = vadd.f32 %v982_v2, %v2114_v34 }
 0xd62   :  { %1792 = vtanh.f32 %v985_v5  ;;  %v1576_v9 = vmul.f32 -1.442695, %v985_v5  ;;  %v1577_v10 = vmul.f32 -1.442695, %v986_v6 }
 0xd63   :  { %1794 = vtanh.f32 %v986_v6 }
 0xd64   :  { %1796 = vpow2.f32 %v1576_v9 }
 0xd65   :  { %1798 = vpow2.f32 %v1577_v10 }
 0xd6f   :  { %v1793_v7 = vpop.eup %1792 }
 0xd70   :  { %v1795_v8 = vpop.eup %1794  ;;  %1011 = vrot.lane.b32.xlu0 %v1793_v7, %s1971_s30 }
 0xd71   :  { %1013 = vrot.lane.b32.xlu1 %v1795_v8, %s1971_s30  ;;  %v1797_v11 = vpop.eup %1796 }
 0xd72   :  { %v1799_v12 = vpop.eup %1798  ;;  %v993_v13 = vadd.f32 1.0, %v1797_v11 }
 0xd73   :  { %v994_v14 = vadd.f32 1.0, %v1799_v12 }
 0xd74   :  { %1800 = vrcp.f32 %v993_v13 }
 0xd75   :  { %1802 = vrcp.f32 %v994_v14 }
 0xd81   :  { %v1801_v15 = vpop.eup %1800 }
 0xd82   :  { %v1803_v19 = vpop.eup %1802  ;;  %v1007_v27 = vmul.f32 %v1801_v15, %v1003_v25 }
 0xd83   :  { %v1008_v28 = vmul.f32 %v1803_v19, %v1004_v26 }
 0xde2   :  { %v1012_v16 = vpop.permute.xlu0 %1011 }
 0xde3   :  { %v1014_v22 = vpop.permute.xlu1 %1013  ;;  %v1017_v23 = vmul.f32 %v1801_v15, %v1012_v16 }
 0xde4   :  { %v1018_v24 = vmul.f32 %v1803_v19, %v1014_v22 }
 0xde5   :  { %1021 = vrot.lane.b32.xlu0 %v1017_v23, %s1972_s7 }
 0xde6   :  { %1023 = vrot.lane.b32.xlu1 %v1018_v24, %s1972_s7 }
 0xe57   :  { %v1022_v29 = vpop.permute.xlu0 %1021 }
 0xe58   :  { %v1024_v30 = vpop.permute.xlu1 %1023  ;;  %v1027_v31 = vadd.f32 %v1022_v29, %v1007_v27 }
 0xe59   :  { %v1028_v32 = vadd.f32 %v1024_v30, %v1008_v28 }
 0xe5a   :  { %1804 = vtanh.f32 %v1027_v31  ;;  %v1143_v0 = vrot.slane %v1027_v31, 7 }
 0xe5b   :  { %1806 = vtanh.f32 %v1028_v32  ;;  %v1144_v1 = vrot.slane %v1028_v32, 7 }
 0xe67   :  { %v1805_v33 = vpop.eup %1804 }
 0xe68   :  { %v1807_v35 = vpop.eup %1806  ;;  %1033 = vrot.lane.b32.xlu0 %v1805_v33, %s1973_s0 }
 0xe69   :  { %1035 = vrot.lane.b32.xlu1 %v1807_v35, %s1973_s0 }
 0xeda   :  { %v1034_v37 = vpop.permute.xlu0 %1033 }
 0xedb   :  { %v1036_v38 = vpop.permute.xlu1 %1035  ;;  %v1039_v39 = vmul.f32 %v1801_v15, %v1034_v37 }
 0xedc   :  { %v1040_v40 = vmul.f32 %v1803_v19, %v1036_v38 }
 0xedd   :  { %v1043_v41 = vrot.slane %v1039_v39, 4 }
 0xede   :  { %v1044_v42 = vrot.slane %v1040_v40, 3 }
 0xee0   :  { %v2206_v44 = vsel %vm486_vm3, %v1044_v42, %v1043_v41 }
 0xee1   :  { %1046 = vrot.lane.b32.xlu0 %v2206_v44, %s1974_s11 }
 0xf53   :  { %v1047_v45 = vpop.permute.xlu0 %1046 }
 0xf54   :  { %1696 = vmatmul.mubr.msk.f32.vlgmr.msra.gmra.mxu0 %vm355_vm4, %v1047_v45 }
 0xf55   :  { %1706 = vmatpush3.msra.mxu0 %v2076_v18  ;;  %1709 = vmatprep.mubr.msk.f32.mxu0 %vm1970_vm2, %v1969_v17 }
 0xf56   :  { %1707 = vmatprep.subr.mxu0 %v1969_v17 }
 0xf57   :  { %1708 = vmatpush3.msra.mxu0 %v2086_v20 }
0x1014   :  { %v1116_v46 = vpop.f32.mrf.mxu0 }
0x1015   :  { %v1121_v47 = vrot.slane %v1116_v46, 3  ;;  %v1122_v48 = vrot.slane %v1116_v46, 4 }
0x1016   :  { %v1697_v49 = vpop.f32.mrf.mxu0 }
0x1017   :  { %v1125_v50 = vadd.f32 %v1121_v47, %v2116_v36  ;;  %v1126_v51 = vadd.f32 %v1122_v48, %v2114_v34 }
0x1019   :  { %1808 = vtanh.f32 %v1125_v50  ;;  %v1579_v18 = vmul.f32 -1.442695, %v1125_v50  ;;  %v1580_v17 = vmul.f32 -1.442695, %v1126_v51 }
0x101a   :  { %1810 = vtanh.f32 %v1126_v51 }
0x101b   :  { %1812 = vpow2.f32 %v1579_v18 }
0x101c   :  { %1814 = vpow2.f32 %v1580_v17 }
0x1026   :  { %v1809_v52 = vpop.eup %1808 }
0x1027   :  { %v1811_v53 = vpop.eup %1810  ;;  %1151 = vrot.lane.b32.xlu1 %v1809_v52, %s1971_s30 }
0x1028   :  { %1153 = vrot.lane.b32.xlu0 %v1811_v53, %s1971_s30  ;;  %v1813_v20 = vpop.eup %1812 }
0x1029   :  { %v1815_v54 = vpop.eup %1814  ;;  %v1133_v55 = vadd.f32 1.0, %v1813_v20 }
0x102a   :  { %v1134_v56 = vadd.f32 1.0, %v1815_v54 }
0x102b   :  { %1816 = vrcp.f32 %v1133_v55 }
0x102c   :  { %1818 = vrcp.f32 %v1134_v56 }
0x1038   :  { %v1817_v57 = vpop.eup %1816 }
0x1039   :  { %v1819_v59 = vpop.eup %1818  ;;  %v1147_v2 = vmul.f32 %v1817_v57, %v1143_v0 }
0x103a   :  { %v1148_v4 = vmul.f32 %v1819_v59, %v1144_v1 }
0x1099   :  { %v1152_v58 = vpop.permute.xlu1 %1151 }
0x109a   :  { %v1154_v60 = vpop.permute.xlu0 %1153  ;;  %v1157_v61 = vmul.f32 %v1817_v57, %v1152_v58 }
0x109b   :  { %v1158_v63 = vmul.f32 %v1819_v59, %v1154_v60 }
0x109c   :  { %1161 = vrot.lane.b32.xlu1 %v1157_v61, %s1972_s7 }
0x109d   :  { %1163 = vrot.lane.b32.xlu0 %v1158_v63, %s1972_s7 }
0x110e   :  { %v1162_v5 = vpop.permute.xlu1 %1161 }
0x110f   :  { %v1164_v6 = vpop.permute.xlu0 %1163  ;;  %v1167_v7 = vadd.f32 %v1162_v5, %v1147_v2 }
0x1110   :  { %v1168_v8 = vadd.f32 %v1164_v6, %v1148_v4 }
0x1111   :  { %1820 = vtanh.f32 %v1167_v7  ;;  %v1283_v47 = vrot.slane %v1167_v7, 7 }
0x1112   :  { %1822 = vtanh.f32 %v1168_v8  ;;  %v1284_v48 = vrot.slane %v1168_v8, 7 }
0x111e   :  { %v1821_v9 = vpop.eup %1820 }
0x111f   :  { %v1823_v10 = vpop.eup %1822  ;;  %1173 = vrot.lane.b32.xlu1 %v1821_v9, %s1973_s0 }
0x1120   :  { %1175 = vrot.lane.b32.xlu0 %v1823_v10, %s1973_s0 }
0x1191   :  { %v1174_v11 = vpop.permute.xlu1 %1173 }
0x1192   :  { %v1176_v12 = vpop.permute.xlu0 %1175  ;;  %v1179_v13 = vmul.f32 %v1817_v57, %v1174_v11 }
0x1193   :  { %v1180_v14 = vmul.f32 %v1819_v59, %v1176_v12 }
0x1194   :  { %v1183_v15 = vrot.slane %v1179_v13, 5 }
0x1195   :  { %v1184_v16 = vrot.slane %v1180_v14, 4 }
0x1197   :  { %v2225_v19 = vsel %vm486_vm3, %v1184_v16, %v1183_v15 }
0x1198   :  { %1186 = vrot.lane.b32.xlu1 %v2225_v19, %s1974_s11 }
0x120a   :  { %v1187_v22 = vpop.permute.xlu1 %1186 }
0x120b   :  { %1703 = vmatmul.mubr.msk.f32.vlgmr.msra.gmra.mxu1 %vm355_vm4, %v1187_v22 }
0x12cb   :  { %v1256_v23 = vpop.f32.mrf.mxu1 }
0x12cc   :  { %v1261_v24 = vrot.slane %v1256_v23, 2  ;;  %v1262_v25 = vrot.slane %v1256_v23, 3 }
0x12cd   :  { %v1704_v26 = vpop.f32.mrf.mxu1 }
0x12ce   :  { %v1265_v27 = vadd.f32 %v1261_v24, %v2116_v36  ;;  %v1266_v28 = vadd.f32 %v1262_v25, %v2114_v34 }
0x12d0   :  { %1824 = vtanh.f32 %v1265_v27  ;;  %v1582_v31 = vmul.f32 -1.442695, %v1265_v27  ;;  %v1583_v32 = vmul.f32 -1.442695, %v1266_v28 }
0x12d1   :  { %1826 = vtanh.f32 %v1266_v28 }
0x12d2   :  { %1828 = vpow2.f32 %v1582_v31 }
0x12d3   :  { %1830 = vpow2.f32 %v1583_v32 }
0x12dd   :  { %v1825_v29 = vpop.eup %1824 }
0x12de   :  { %v1827_v30 = vpop.eup %1826  ;;  %1291 = vrot.lane.b32.xlu0 %v1825_v29, %s1971_s30 }
0x12df   :  { %1293 = vrot.lane.b32.xlu1 %v1827_v30, %s1971_s30  ;;  %v1829_v33 = vpop.eup %1828 }
0x12e0   :  { %v1831_v35 = vpop.eup %1830  ;;  %v1273_v37 = vadd.f32 1.0, %v1829_v33 }
0x12e1   :  { %v1274_v38 = vadd.f32 1.0, %v1831_v35 }
0x12e2   :  { %1832 = vrcp.f32 %v1273_v37 }
0x12e3   :  { %1834 = vrcp.f32 %v1274_v38 }
0x12ef   :  { %v1833_v39 = vpop.eup %1832 }
0x12f0   :  { %v1835_v41 = vpop.eup %1834  ;;  %v1287_v49 = vmul.f32 %v1833_v39, %v1283_v47 }
0x12f1   :  { %v1288_v50 = vmul.f32 %v1835_v41, %v1284_v48 }
0x1350   :  { %v1292_v40 = vpop.permute.xlu0 %1291 }
0x1351   :  { %v1294_v42 = vpop.permute.xlu1 %1293  ;;  %v1297_v45 = vmul.f32 %v1833_v39, %v1292_v40 }
0x1352   :  { %v1298_v46 = vmul.f32 %v1835_v41, %v1294_v42 }
0x1353   :  { %1301 = vrot.lane.b32.xlu0 %v1297_v45, %s1972_s7 }
0x1354   :  { %1303 = vrot.lane.b32.xlu1 %v1298_v46, %s1972_s7 }
0x13c5   :  { %v1302_v51 = vpop.permute.xlu0 %1301 }
0x13c6   :  { %v1304_v52 = vpop.permute.xlu1 %1303  ;;  %v1307_v53 = vadd.f32 %v1302_v51, %v1287_v49 }
0x13c7   :  { %v1308_v18 = vadd.f32 %v1304_v52, %v1288_v50 }
0x13c8   :  { %1836 = vtanh.f32 %v1307_v53  ;;  %v1423_v23 = vrot.slane %v1307_v53, 7 }
0x13c9   :  { %1838 = vtanh.f32 %v1308_v18  ;;  %v1424_v24 = vrot.slane %v1308_v18, 7 }
0x13d5   :  { %v1837_v17 = vpop.eup %1836 }
0x13d6   :  { %v1839_v20 = vpop.eup %1838  ;;  %1313 = vrot.lane.b32.xlu0 %v1837_v17, %s1973_s0 }
0x13d7   :  { %1315 = vrot.lane.b32.xlu1 %v1839_v20, %s1973_s0 }
0x1448   :  { %v1314_v54 = vpop.permute.xlu0 %1313 }
0x1449   :  { %v1316_v55 = vpop.permute.xlu1 %1315  ;;  %v1319_v56 = vmul.f32 %v1833_v39, %v1314_v54 }
0x144a   :  { %v1320_v57 = vmul.f32 %v1835_v41, %v1316_v55 }
0x144b   :  { %v1323_v58 = vrot.slane %v1319_v56, 6 }
0x144c   :  { %v1324_v59 = vrot.slane %v1320_v57, 5 }
0x144e   :  { %v1325_v60 = vsel %vm486_vm3, %v1324_v59, %v1323_v58 }
0x144f   :  { %1326 = vrot.lane.b32.xlu0 %v1325_v60, %s1974_s11 }
0x14c1   :  { %v1327_v61 = vpop.permute.xlu0 %1326 }
0x14c2   :  { %1710 = vmatmul.mubr.msk.f32.vlgmr.msra.gmra.mxu0 %vm355_vm4, %v1327_v61 }
0x1582   :  { %v1396_v63 = vpop.f32.mrf.mxu0 }
0x1583   :  { %v1401_v0 = vrot.slane %v1396_v63, 1  ;;  %v1402_v1 = vrot.slane %v1396_v63, 2 }
0x1584   :  { %v1711_v2 = vpop.f32.mrf.mxu0 }
0x1585   :  { %v1405_v4 = vadd.f32 %v1401_v0, %v2116_v36  ;;  %v1406_v5 = vadd.f32 %v1402_v1, %v2114_v34 }
0x1587   :  { %1840 = vtanh.f32 %v1405_v4  ;;  %v1585_v8 = vmul.f32 -1.442695, %v1405_v4  ;;  %v1586_v9 = vmul.f32 -1.442695, %v1406_v5 }
0x1588   :  { %1842 = vtanh.f32 %v1406_v5 }
0x1589   :  { %1844 = vpow2.f32 %v1585_v8 }
0x158a   :  { %1846 = vpow2.f32 %v1586_v9 }
0x1594   :  { %v1841_v6 = vpop.eup %1840 }
0x1595   :  { %v1843_v7 = vpop.eup %1842  ;;  %1431 = vrot.lane.b32.xlu1 %v1841_v6, %s1971_s30 }
0x1596   :  { %1433 = vrot.lane.b32.xlu0 %v1843_v7, %s1971_s30  ;;  %v1845_v10 = vpop.eup %1844 }
0x1597   :  { %v1847_v11 = vpop.eup %1846  ;;  %v1413_v12 = vadd.f32 1.0, %v1845_v10 }
0x1598   :  { %v1414_v13 = vadd.f32 1.0, %v1847_v11 }
0x1599   :  { %1848 = vrcp.f32 %v1413_v12 }
0x159a   :  { %1850 = vrcp.f32 %v1414_v13 }
0x15a6   :  { %v1849_v36 = vpop.eup %1848 }
0x15a7   :  { %v1851_v14 = vpop.eup %1850  ;;  %v1427_v25 = vmul.f32 %v1849_v36, %v1423_v23 }
0x15a8   :  { %v1428_v26 = vmul.f32 %v1851_v14, %v1424_v24 }
0x1607   :  { %v1432_v34 = vpop.permute.xlu1 %1431 }
0x1608   :  { %v1434_v15 = vpop.permute.xlu0 %1433  ;;  %v1437_v16 = vmul.f32 %v1849_v36, %v1432_v34 }
0x1609   :  { %v1438_v22 = vmul.f32 %v1851_v14, %v1434_v15 }
0x160a   :  { %1441 = vrot.lane.b32.xlu1 %v1437_v16, %s1972_s7 }
0x160b   :  { %1443 = vrot.lane.b32.xlu0 %v1438_v22, %s1972_s7 }
0x167c   :  { %v1442_v27 = vpop.permute.xlu1 %1441 }
0x167d   :  { %v1444_v28 = vpop.permute.xlu0 %1443  ;;  %v1447_v29 = vadd.f32 %v1442_v27, %v1427_v25 }
0x167e   :  { %v1448_v30 = vadd.f32 %v1444_v28, %v1428_v26 }
0x167f   :  { %1852 = vtanh.f32 %v1447_v29 }
0x1680   :  { %1854 = vtanh.f32 %v1448_v30 }
0x168c   :  { %v1853_v31 = vpop.eup %1852 }
0x168d   :  { %v1855_v32 = vpop.eup %1854  ;;  %1453 = vrot.lane.b32.xlu1 %v1853_v31, %s1973_s0 }
0x168e   :  { %1455 = vrot.lane.b32.xlu0 %v1855_v32, %s1973_s0 }
0x1691   :  { %1462 = vrot.lane.b32.xlu1 %v2147_v43, %s1971_s30 }
0x1692   :  { %1465 = vrot.lane.b32.xlu0 %v2167_v21, %s1975_s12 }
0x1695   :  { %1469 = vrot.lane.b32.xlu1 %v2206_v44, %s1972_s7  ;;  %v1512_v44 = vrot.slane %v1448_v30, 7 }
0x1696   :  { %1472 = vrot.lane.b32.xlu0 %v2225_v19, %s1973_s0 }
0x1699   :  { %1475 = vrot.lane.b32.xlu1 %v1325_v60, %s1976_s13 }
0x16ff   :  { %v1454_v33 = vpop.permute.xlu1 %1453 }
0x1700   :  { %v1456_v35 = vpop.permute.xlu0 %1455  ;;  %v1459_v37 = vmul.f32 %v1849_v36, %v1454_v33 }
0x1701   :  { %v1460_v38 = vmul.f32 %v1851_v14, %v1456_v35 }
0x1702   :  { %1500 = vrot.lane.b32.xlu1 %v1459_v37, %s1974_s11  ;;  %v1480_v43 = vrot.slane %v1459_v37, 7 }
0x1703   :  { %v1499_v39 = vrot.slane %v1460_v38, 7  ;;  %v1481_v40 = vrot.slane %v1460_v38, 6  ;;  %v1463_v19 = vpop.permute.xlu1 %1462 }
0x1704   :  { %v1466_v42 = vpop.permute.xlu0 %1465  ;;  %v1486_v45 = vsel %vm355_vm4, %v2128_v3, %v1463_v19 }
0x1705   :  { %1502 = vrot.lane.b32.xlu0 %v1499_v39, %s1974_s11  ;;  %v1482_v21 = vsel %vm486_vm3, %v1481_v40, %v1480_v43  ;;  %v1487_v47 = vsel %vm84_vm0, %v1486_v45, %v1466_v42 }
0x1706   :  { %1513 = vrot.lane.b32.xlu1 %v1447_v29, %s1975_s12  ;;  %v1489_v49 = vsel %vm1488_vm5, %v1487_v47, %v2187_v62 }
0x1707   :  { %v1470_v41 = vpop.permute.xlu1 %1469 }
0x1708   :  { %v1473_v48 = vpop.permute.xlu0 %1472  ;;  %v1491_v51 = vsel %vm1490_vm7, %v1489_v49, %v1470_v41 }
0x1709   :  { %1483 = vrot.lane.b32.xlu0 %v1482_v21, %s1977_s14 }
0x170b   :  { %v1476_v46 = vpop.permute.xlu1 %1475 }
0x170d   :  { %1515 = vrot.lane.b32.xlu0 %v1512_v44, %s1975_s12 }
0x1774   :  { %v1501_v50 = vpop.permute.xlu1 %1500 }
0x1775   :  { %1507 = vst.msk [vmem:[#allocation8 - $0x7] sm:$0x80] %vm1506_vm6, %v1501_v50 }
0x1777   :  { %v1503_v52 = vpop.permute.xlu0 %1502 }
0x1778   :  { %1509 = vst.msk [vmem:[#allocation8 + $0x1] sm:$0x1] %vm1508_vm8, %v1503_v52  ;;  %v1514_v3 = vpop.permute.xlu1 %1513 }
0x1779   :  { %1519 = vst.msk [vmem:[#allocation9 - $0x7] sm:$0x80] %vm1506_vm6, %v1514_v3 }
0x177a   :  { %1927 = shalt.err (!%p1924_p5)
}
0x177b   :  { %1532 = dma.vmem_to_hbm [thread:$0]  %s1530_s4, 32, %s2285_s9, [#allocation4]   ;;  %v1493_v62 = vsel %vm1492_vm9, %v1491_v51, %v1473_v48  ;;  %v1484_v18 = vpop.permute.xlu0 %1483 }
0x177c   :  { %v1495_v53 = vsel %vm1494_vm10, %v1493_v62, %v1476_v46  ;;  %s1979_s19 = smov [#allocation9]  }
0x177d   :  { %s1539_s20 = sshll.u32 %s1979_s19, 4  ;;  %v1497_v17 = vsel %vm1496_vm11, %v1495_v53, %v1484_v18  ;;  %s1540_s20 = int_to_ptr.vmem [resolvable:$true] %s1539_s20 }
0x177e   :  { %1498 = vst [vmem:[%s2284_s8] sm:$0x3] %v1497_v17  ;;  %s1936_s22 = scalar_lea.vmem %s1540_s20, 32  ;;  %p1941_p7 = scmp.lt.s32.totalorder %s1540_s20, %s1540_s20 }
0x177f   :  { %v1516_v20 = vpop.permute.xlu0 %1515  ;;  %p1937_p6 = scmp.ne.s32.totalorder %s1540_s20, %s1936_s22  ;;  %p1942_p8 = scmp.lt.s32.totalorder %s1936_s22, %s1936_s22 }
0x1780   :  { %1520 = vst.msk [vmem:[#allocation9 + $0x1] sm:$0x1] %vm1508_vm8, %v1516_v20 }
0x1781   :  { %p1943_p9 = por %p1942_p8, %p1941_p7 }
0x1783   :  { %p1944_p10 = pnand %p1943_p9, %p1937_p6 }
0x1785   :  { %1947 = shalt.err (!%p1944_p10)
}
0x1786   :  { %1542 = dma.vmem_to_hbm [thread:$0]  %s1540_s20, 32, %s2286_s10, [#allocation10]  }
0x1787   :  { %1960 = dma.done.wait [#allocation4], 32  }
0x1788   :  { %1961 = vsyncadd [#allocation4], 4294967264 }
0x1789   :  { %1962 = dma.done.wait [#allocation10], 32  }
0x178a   :  { %1963 = vsyncadd [#allocation10], 4294967264 }
0x178b   :  { %1551 = vsyncpa [#allocation3], 1 }
0x178c   :  { %1552 = vsyncpa [#allocation6], 1 }
0x178d   :  { %1553 = vsyncpa [#allocation4], 1 }
0x178e   :  { %1554 = vsyncpa [#allocation10], 1 }

</bundles_post_ra>
